<compile_context>
chip_gen: v5e
topology: v5e:2x2
jax: 0.10.0
libtpu: 0.0.40
codegen_flags: <defaults>
</compile_context>

<pallas_src>
import functools

import jax
import jax.numpy as jnp
from jax import lax
from jax.experimental import pallas as pl
from jax.experimental.pallas import tpu as pltpu


def _window_sum_flat(xp, ksize, out_len, C):
    """Dense (stride-1) sliding-window sums over time, computed directly in the
    lane-dense flattened (bt, time*C) layout.

    xp: (bt, (out_len + ksize - 1) * C) float32, already replicate-padded.
    Returns ws: (bt, out_len * C) with
        ws[:, i*C + c] = sum_{j < ksize} xp[:, (i + j)*C + c].

    Uses a binary decomposition of ksize: ~2*log2(ksize) contiguous lane-axis
    slices + elementwise adds (all VPU/XLU work, no strided access).
    """
    acc = None
    consumed = 0          # number of taps already folded into `acc`
    cur = xp              # width-`width` window sums, flattened over time*C
    width = 1
    kk = ksize
    while kk > 0:
        if kk & 1:
            piece = lax.slice_in_dim(
                cur, consumed * C, (consumed + out_len) * C, axis=1)
            acc = piece if acc is None else acc + piece
            consumed += width
        kk >>= 1
        if kk > 0:
            n = cur.shape[1]
            cur = (lax.slice_in_dim(cur, 0, n - width * C, axis=1)
                   + lax.slice_in_dim(cur, width * C, n, axis=1))
            width *= 2
    return acc


def _moving_avg_kernel(x_ref, o_ref, *, L, C, pad, kernel_size, stride,
                       n_dense, decimate):
    # x_ref : (bt, L * C)        lane-dense flattened input block
    # o_ref : (bt, n_out * C)    lane-dense flattened output block
    x = x_ref[...].astype(jnp.float32)

    # Replicate-padding along time, built in registers (no VMEM scratch and no
    # HBM round trip).  In the flat layout, one time step == C lanes.
    if pad > 0:
        first = x[:, 0:C]                       # (bt, C) -- first time step
        last = x[:, (L - 1) * C:L * C]          # (bt, C) -- last time step
        xp = jnp.concatenate([first] * pad + [x] + [last] * pad, axis=1)
    else:
        xp = x

    ws = _window_sum_flat(xp, kernel_size, n_dense, C)   # (bt, n_dense * C)
    mean = ws * (1.0 / kernel_size)

    if decimate and stride > 1:
        # In-kernel decimation: select every stride-th time step (static lane
        # slices) so only the strided output ever reaches HBM.
        L_out = (n_dense - 1) // stride + 1
        mean = jnp.concatenate(
            [mean[:, (i * stride) * C:(i * stride + 1) * C]
             for i in range(L_out)], axis=1)

    o_ref[...] = mean.astype(o_ref.dtype)


def _tiling_params(B, L, C, L_pad, n_dense, in_bytes, out_bytes):
    """Pick the batch tile `bt` and a vmem_limit per TPU generation."""
    try:
        kind = jax.devices()[0].device_kind.lower()
    except Exception:  # pragma: no cover - non-TPU fallback
        kind = ""

    if "v7" in kind:
        # v7x: 64 MiB VMEM per TensorCore, 2 TCs.  Moderate blocks, and keep
        # >= 2 grid steps (both cores busy) once the problem is big enough.
        block_budget, vmem_limit, split_for_cores = 6 << 20, 40 << 20, True
    elif "v5" in kind or "v6" in kind:
        # v5e / v6e: single TensorCore, 128 MiB VMEM.  Few, big grid steps.
        block_budget, vmem_limit, split_for_cores = 24 << 20, 100 << 20, False
    else:
        # Unknown backend: conservative sizes.
        block_budget, vmem_limit, split_for_cores = 4 << 20, 32 << 20, False

    # Per-batch-element VMEM footprint: double-buffered in/out blocks plus
    # ~3 live f32 temporaries of padded length inside the window sum.
    per_b = (2 * L * C * in_bytes + 2 * n_dense * C * out_bytes
             + 3 * L_pad * C * 4)
    cap = max(1, block_budget // per_b)
    if split_for_cores and B >= 2 and B * per_b > (1 << 20):
        # Only split once the total problem is large enough that per-step
        # overhead (~0.35us) is negligible vs. the DMA/compute it buys.
        cap = min(cap, (B + 1) // 2)

    bt = 1
    for d in range(1, B + 1):
        if B % d != 0 or d > cap:
            continue
        # Keep blocks (8,128)-friendly on the sublane (second-to-last) axis.
        if d == B or d % 8 == 0:
            bt = d
    return bt, vmem_limit


def moving_avg(x, kernel_size, stride):
    """x: (B, L, C) -> (B, L_out, C); identical to the PyTorch module."""
    B, L, C = x.shape
    pad = (kernel_size - 1) // 2
    L_pad = L + 2 * pad
    L_out = (L_pad - kernel_size) // stride + 1
    assert L_out >= 1, "kernel_size too large for this sequence length"
    # Dense (stride-1) window positions the kernel must cover.
    n_dense = (L_out - 1) * stride + 1

    # In-kernel decimation for stride > 1 unless the unrolled row selection
    # would get unwieldy at trace time (rare path).
    decimate = (stride > 1) and (L_out <= 256)
    n_out = L_out if (stride == 1 or decimate) else n_dense

    in_bytes = jnp.dtype(x.dtype).itemsize
    bt, vmem_limit = _tiling_params(B, L, C, L_pad, n_dense, in_bytes, in_bytes)

    # Lane-dense HBM-facing view: free reshape, last two dims are contiguous.
    x_flat = x.reshape(B, L * C)

    kernel = functools.partial(
        _moving_avg_kernel, L=L, C=C, pad=pad, kernel_size=kernel_size,
        stride=stride, n_dense=n_dense, decimate=decimate)

    out_flat = pl.pallas_call(
        kernel,
        out_shape=jax.ShapeDtypeStruct((B, n_out * C), x.dtype),
        grid=(B // bt,),
        in_specs=[pl.BlockSpec((bt, L * C), lambda b: (b, 0))],
        out_specs=pl.BlockSpec((bt, n_out * C), lambda b: (b, 0)),
        compiler_params=pltpu.CompilerParams(
            dimension_semantics=("parallel",),
            vmem_limit_bytes=vmem_limit),
    )(x_flat)

    out = out_flat.reshape(B, n_out, C)
    if stride > 1 and not decimate:
        # Fallback (very large L_out only): decimate the dense output here.
        out = out[:, ::stride, :]
    return out


def _moving_avg_ref(x, kernel_size, stride):
    """Pure-JAX reference mirroring the PyTorch forward."""
    pad = (kernel_size - 1) // 2
    front = jnp.repeat(x[:, :1, :], pad, axis=1)
    end = jnp.repeat(x[:, -1:, :], pad, axis=1)
    xp = jnp.concatenate([front, x, end], axis=1).astype(jnp.float32)
    L_pad = xp.shape[1]
    L_out = (L_pad - kernel_size) // stride + 1
    cols = [jnp.mean(xp[:, i * stride:i * stride + kernel_size, :], axis=1)
            for i in range(L_out)]
    return jnp.stack(cols, axis=1).astype(x.dtype)


if __name__ == "__main__":
    key = jax.random.PRNGKey(0)
    cases = [
        # (B,  L,  C, kernel_size, stride, dtype,        tol)
        (2, 16, 8, 5, 1, jnp.float32, 1e-5),    # original / primary case
        (2, 16, 8, 5, 1, jnp.bfloat16, 2e-2),   # bf16 path
        (2, 16, 8, 4, 2, jnp.float32, 1e-5),    # even kernel + stride > 1
        (3, 48, 8, 25, 1, jnp.float32, 1e-5),   # large window (log-split path)
        (2, 16, 8, 1, 1, jnp.float32, 1e-5),    # kernel_size == 1 (pad == 0)
    ]
    for i, (B, L, C, ks, st, dtype, tol) in enumerate(cases):
        key, sub = jax.random.split(key)
        x = jax.random.normal(sub, (B, L, C), dtype=jnp.float32).astype(dtype)

        out = jax.block_until_ready(moving_avg(x, ks, st))
        ref = _moving_avg_ref(x, ks, st)

        assert out.shape == ref.shape, (i, out.shape, ref.shape)
        assert jnp.allclose(out.astype(jnp.float32), ref.astype(jnp.float32),
                            atol=tol, rtol=tol), f"mismatch vs reference in case {i}"

    print("KERNEL_OK")
</pallas_src>

<mosaic_0001>
module attributes {stable_mosaic.version = 11 : i64} {
  func.func @_moving_avg_kernel(%arg0: i32, %arg1: memref<2x128xf32, #tpu.memory_space<vmem>>, %arg2: memref<2x128xf32, #tpu.memory_space<vmem>>) attributes {dimension_semantics = [#tpu.dimension_semantics<parallel>], iteration_bounds = array<i64: 1>, scalar_prefetch = 0 : i64, scratch_operands = 0 : i64, tpu.core_type = #tpu.core_type<tc>, window_params = [{transform_indices = @transform_0, window_bounds = array<i64: 2, 128>}, {transform_indices = @transform_1, window_bounds = array<i64: 2, 128>}]} {
    %c0 = arith.constant 0 : index
    %c0_0 = arith.constant 0 : index
    %0 = vector.load %arg1[%c0, %c0_0] : memref<2x128xf32, #tpu.memory_space<vmem>>, vector<2x128xf32>
    %1 = vector.extract_strided_slice %0 {offsets = [0, 0], sizes = [2, 8], strides = [1, 1]} : vector<2x128xf32> to vector<2x8xf32>
    %2 = vector.extract_strided_slice %0 {offsets = [0, 120], sizes = [2, 8], strides = [1, 1]} : vector<2x128xf32> to vector<2x8xf32>
    %3 = tpu.concatenate %1, %1, %0, %2, %2 in 1 : vector<2x8xf32>, vector<2x8xf32>, vector<2x128xf32>, vector<2x8xf32>, vector<2x8xf32> -> vector<2x160xf32>
    %4 = vector.extract_strided_slice %3 {offsets = [0, 0], sizes = [2, 128], strides = [1, 1]} : vector<2x160xf32> to vector<2x128xf32>
    %5 = vector.extract_strided_slice %3 {offsets = [0, 0], sizes = [2, 152], strides = [1, 1]} : vector<2x160xf32> to vector<2x152xf32>
    %6 = vector.extract_strided_slice %3 {offsets = [0, 8], sizes = [2, 152], strides = [1, 1]} : vector<2x160xf32> to vector<2x152xf32>
    %7 = arith.addf %5, %6 : vector<2x152xf32>
    %8 = vector.extract_strided_slice %7 {offsets = [0, 0], sizes = [2, 136], strides = [1, 1]} : vector<2x152xf32> to vector<2x136xf32>
    %9 = vector.extract_strided_slice %7 {offsets = [0, 16], sizes = [2, 136], strides = [1, 1]} : vector<2x152xf32> to vector<2x136xf32>
    %10 = arith.addf %8, %9 : vector<2x136xf32>
    %11 = vector.extract_strided_slice %10 {offsets = [0, 8], sizes = [2, 128], strides = [1, 1]} : vector<2x136xf32> to vector<2x128xf32>
    %12 = arith.addf %4, %11 : vector<2x128xf32>
    %cst = arith.constant 2.000000e-01 : f32
    %13 = vector.broadcast %cst : f32 to vector<2x128xf32>
    %14 = arith.mulf %12, %13 : vector<2x128xf32>
    %c0_1 = arith.constant 0 : index
    %c0_2 = arith.constant 0 : index
    %15 = vector.load %arg2[%c0_1, %c0_2] : memref<2x128xf32, #tpu.memory_space<vmem>>, vector<2x128xf32>
    tpu.vector_store %arg2[%c0_1, %c0_2], %14 {strides = array<i32>} : memref<2x128xf32, #tpu.memory_space<vmem>>, vector<2x128xf32>,
    return
  }
  func.func @transform_0(%arg0: i32) -> (i32, i32) {
    %c0_i32 = arith.constant 0 : i32
    %c0_i32_0 = arith.constant 0 : i32
    return %arg0, %c0_i32 : i32, i32
  }
  func.func @transform_1(%arg0: i32) -> (i32, i32) {
    %c0_i32 = arith.constant 0 : i32
    %c0_i32_0 = arith.constant 0 : i32
    return %arg0, %c0_i32 : i32, i32
  }
}

</mosaic_0001>

<bundles_post_ra>
// kernel: tpu_custom_call.1
= control target key start
LH: loop header
LB: loop body
LE: loop exit
PB: predicated region body
PF: predicated region fallthrough
CT: control target
= control target key end

     0   :  { %6 = vsyncpa [#allocation3], 0  ;;  %s182_s0 = inlined_call_operand.hbm [shape: f32[2,128], index: 0, kind: input, shape index: {}]   ;;  %s183_s1 = inlined_call_operand.hbm [shape: f32[2,128], index: 1, kind: output, shape index: {}]  }
   0x1   :  { %7 = vsyncpa [#allocation4], 0  ;;  %s13_s8 = sshll.u32 %s182_s0, 4  ;;  %s156_s9 = smov [#allocation2]   ;;  %s14_s8 = int_to_ptr.hbm [resolvable:$true] %s13_s8 }
   0x2   :  { %s15_s10 = sshll.u32 %s156_s9, 4  ;;  %s16_s10 = int_to_ptr.vmem [resolvable:$true] %s15_s10 }
   0x3   :  { %18 = dma.hbm_to_vmem [thread:$0]  %s14_s8, 32, %s16_s10, [#allocation3]  }
   0x4   :  { %152 = dma.done.wait [#allocation3], 32  }
   0x5   :  { %153 = vsyncadd [#allocation3], 4294967264  ;;  %v23_v0 = vld [vmem:[#allocation2] sm:$0x3]  ;;  %s157_s11 = smov 8   ;;  %s158_s12 = smov 24  }
   0x6   :  { %25 = vrot.lane.b32.xlu0 %v23_v0, %s157_s11  ;;  %31 = vrot.lane.b32.xlu1 %v23_v0, %s158_s12  ;;  %s159_s13 = smov 16   ;;  %s160_s14 = smov 32   ;;  %vm37_vm0 = vcmask 64512   ;;  %vm39_vm1 = vcmask 130048   ;;  %vm42_vm2 = vcmask 195584   ;;  %vm50_vm3 = vcmask 982016  }
   0x7   :  { %s161_s0 = smov 120   ;;  %s162_s15 = smov 112   ;;  %vm62_vm4 = vcmask 916480  }
   0x8   :  { %s163_s16 = smov [#allocation5]   ;;  %s86_s20 = sshll.u32 %s183_s1, 4  ;;  %s87_s20 = int_to_ptr.hbm [resolvable:$true] %s86_s20 }
   0x9   :  { %s84_s17 = sshll.u32 %s163_s16, 4  ;;  %s85_s17 = int_to_ptr.vmem [resolvable:$true] %s84_s17 }
   0xe   :  { %28 = vrot.lane.b32.xlu0 %v23_v0, %s159_s13  ;;  %34 = vrot.lane.b32.xlu1 %v23_v0, %s160_s14 }
  0x78   :  { %v26_v1 = vpop.permute.xlu0 %25  ;;  %v32_v2 = vpop.permute.xlu1 %31 }
  0x79   :  { %v38_v3 = vsel %vm37_vm0, %v23_v0, %v26_v1 }
  0x80   :  { %v29_v4 = vpop.permute.xlu0 %28  ;;  %v35_v7 = vpop.permute.xlu1 %34 }
  0x81   :  { %v40_v5 = vsel %vm39_vm1, %v38_v3, %v29_v4  ;;  %v41_v6 = vsel %vm39_vm1, %v29_v4, %v32_v2 }
  0x82   :  { %46 = vrot.lane.b32.xlu2 %v40_v5, %s161_s0  ;;  %v43_v8 = vsel %vm42_vm2, %v41_v6, %v35_v7 }
  0x8a   :  { %48 = vrot.lane.b32.xlu2 %v43_v8, %s161_s0 }
  0xdc   :  { %v47_v9 = vpop.permute.xlu2 %46 }
  0xe4   :  { %v49_v10 = vpop.permute.xlu2 %48 }
  0xe5   :  { %v51_v11 = vsel %vm50_vm3, %v47_v9, %v49_v10  ;;  %v55_v12 = vadd.f32 %v49_v10, %v43_v8 }
  0xe6   :  { %v54_v13 = vadd.f32 %v51_v11, %v40_v5 }
  0xe7   :  { %60 = vrot.lane.b32.xlu1 %v55_v12, %s162_s15 }
  0xe8   :  { %58 = vrot.lane.b32.xlu0 %v54_v13, %s162_s15 }
 0x159   :  { %v61_v14 = vpop.permute.xlu1 %60 }
 0x15a   :  { %v67_v15 = vadd.f32 %v61_v14, %v55_v12  ;;  %v59_v16 = vpop.permute.xlu0 %58 }
 0x15b   :  { %v63_v17 = vsel %vm62_vm4, %v59_v16, %v61_v14 }
 0x15c   :  { %v66_v18 = vadd.f32 %v63_v17, %v54_v13  ;;  %72 = vrot.lane.b32.xlu0 %v67_v15, %s161_s0 }
 0x15e   :  { %70 = vrot.lane.b32.xlu2 %v66_v18, %s161_s0 }
 0x1b8   :  { %v71_v19 = vpop.permute.xlu2 %70 }
 0x1ce   :  { %v73_v20 = vpop.permute.xlu0 %72 }
 0x1cf   :  { %v74_v21 = vsel %vm50_vm3, %v71_v19, %v73_v20 }
 0x1d0   :  { %v76_v22 = vadd.f32 %v74_v21, %v40_v5 }
 0x1d2   :  { %v77_v23 = vmul.f32 0.2, %v76_v22 }
 0x1d4   :  { %78 = vst [vmem:[#allocation5] sm:$0x3] %v77_v23 }
 0x1d5   :  { %89 = dma.vmem_to_hbm [thread:$0]  %s85_s17, 32, %s87_s20, [#allocation4]  }
 0x1d6   :  { %154 = dma.done.wait [#allocation4], 32  }
 0x1d7   :  { %155 = vsyncadd [#allocation4], 4294967264 }
 0x1d8   :  { %94 = vsyncpa [#allocation3], 1 }
 0x1d9   :  { %95 = vsyncpa [#allocation4], 1 }

</bundles_post_ra>
